<compile_context>
chip_gen: v7x
topology: tpu7x:2x2x1
jax: 0.10.0
libtpu: 0.0.40
codegen_flags: <defaults>
</compile_context>

<pallas_src>
import jax
import jax.numpy as jnp
from jax import lax
from jax.experimental import pallas as pl
from jax.experimental.pallas import tpu as pltpu


def _log_sigmoid(x):
    # Numerically stable log(sigmoid(x)) = min(x, 0) - log1p(exp(-|x|)).
    return jnp.minimum(x, 0.0) - jnp.log1p(jnp.exp(-jnp.abs(x)))


def _make_nsl_kernel(B, tile_b, N, D):
    def kernel(in_ref, out_ref, neg_ref, partial_ref):
        # (tile_b, D) tiles; upcast to f32 immediately (bf16 storage supported).
        x = in_ref[...].astype(jnp.float32)
        o = out_ref[...].astype(jnp.float32)

        # Positive term: log_sigmoid(<out_b, in_b>)
        pos = jnp.sum(x * o, axis=-1, keepdims=True)            # (tile_b, 1)
        per_row = _log_sigmoid(pos)                              # (tile_b, 1)

        # Negative terms: sum_n log_sigmoid(-<neg_{b,n}, in_b>)
        # neg_ref is packed (tile_b, N*D); static per-n lane slices, no
        # (tile_b, N, D) f32 temporary, negate only the (tile_b, 1) dot.
        for j in range(N):
            nj = neg_ref[:, j * D:(j + 1) * D].astype(jnp.float32)   # (tile_b, D)
            d = jnp.sum(nj * x, axis=-1, keepdims=True)              # (tile_b, 1)
            per_row = per_row + _log_sigmoid(-d)

        # Mask rows of a padded last tile so the final /B mean is unbiased.
        row = lax.broadcasted_iota(jnp.int32, (tile_b, 1), 0)
        valid = (pl.program_id(0) * tile_b + row) < B
        per_row = jnp.where(valid, per_row, 0.0)

        # Per-tile partial sum; final (-sum / B) done in the wrapper.
        partial_ref[...] = jnp.sum(per_row).reshape(1, 1, 1)

    return kernel


def negative_sampling_loss(in_embed, out_embed, neg_embed, *, tile_b=None):
    B, D = in_embed.shape
    Bn, N, Dn = neg_embed.shape
    assert Bn == B and Dn == D
    itemsize = jnp.dtype(in_embed.dtype).itemsize

    if tile_b is None:
        # Cap the per-tile f32 working set around 4 MiB (x2 for double
        # buffering) -> fits default scoped VMEM on v5e/v6e/v7x.
        bytes_per_row = (N + 2) * D * 4
        tile_b = max(8, min(B, (4 * 1024 * 1024) // max(bytes_per_row, 1)))
        tile_b = min(tile_b, 1024)
    if B >= 8:
        tile_b = max(8, (min(tile_b, B) // 8) * 8)   # sublane-aligned tiles
    else:
        tile_b = B
    num_tiles = pl.cdiv(B, tile_b)

    # Pack negatives 2-D so sublanes/lanes are dense and the block DMA is one
    # contiguous (tile_b, N*D) slab.
    neg2 = neg_embed.reshape(B, N * D)

    kernel = _make_nsl_kernel(B, tile_b, N, D)
    cost = pl.CostEstimate(
        flops=2 * B * (N + 1) * D,
        transcendentals=2 * B * (N + 1),
        bytes_accessed=B * (N + 2) * D * itemsize + num_tiles * 4,
    )

    partials = pl.pallas_call(
        kernel,
        out_shape=jax.ShapeDtypeStruct((num_tiles, 1, 1), jnp.float32),
        grid=(num_tiles,),
        in_specs=[
            pl.BlockSpec((tile_b, D), lambda i: (i, 0)),
            pl.BlockSpec((tile_b, D), lambda i: (i, 0)),
            pl.BlockSpec((tile_b, N * D), lambda i: (i, 0)),
        ],
        out_specs=pl.BlockSpec((1, 1, 1), lambda i: (i, 0, 0)),
        compiler_params=pltpu.CompilerParams(
            dimension_semantics=("parallel",)),
        cost_estimate=cost,
    )(in_embed, out_embed, neg2)

    return -(jnp.sum(partials) / jnp.float32(B))


def _reference(in_embed, out_embed, neg_embed):
    # Pure-JAX mirror of the PyTorch forward (elementwise, f32, no MXU).
    x = in_embed.astype(jnp.float32)
    o = out_embed.astype(jnp.float32)
    n = neg_embed.astype(jnp.float32)
    out_loss = jax.nn.log_sigmoid(jnp.sum(o * x, axis=-1))                       # (B,)
    neg_dot = -jnp.sum(n * x[:, None, :], axis=-1)                               # (B, N)
    noise = jax.nn.log_sigmoid(neg_dot).sum(axis=1)                              # (B,)
    return -jnp.mean(out_loss + noise)


if __name__ == "__main__":
    key = jax.random.PRNGKey(0)
    k1, k2, k3 = jax.random.split(key, 3)

    B, N, D = 16, 4, 128   # batch, negative samples, embedding dim
    in_embed = jax.random.normal(k1, (B, D), dtype=jnp.float32)
    out_embed = jax.random.normal(k2, (B, D), dtype=jnp.float32)
    neg_embed = jax.random.normal(k3, (B, N, D), dtype=jnp.float32)

    # f32 path (tile_b=8 -> grid of 2, exercises per-tile partials).
    loss = negative_sampling_loss(in_embed, out_embed, neg_embed, tile_b=8)
    jax.block_until_ready(loss)
    ref = _reference(in_embed, out_embed, neg_embed)
    assert jnp.allclose(loss, ref, rtol=1e-4, atol=1e-4), (loss, ref)

    # bf16-in-HBM path (upcast in kernel, f32 accumulation).
    loss_bf16 = negative_sampling_loss(
        in_embed.astype(jnp.bfloat16),
        out_embed.astype(jnp.bfloat16),
        neg_embed.astype(jnp.bfloat16),
        tile_b=8,
    )
    jax.block_until_ready(loss_bf16)
    assert jnp.allclose(loss_bf16, ref, rtol=5e-2, atol=5e-1), (loss_bf16, ref)

    print("KERNEL_OK")
</pallas_src>

<mosaic_0001>
module attributes {stable_mosaic.version = 11 : i64} {
  func.func @kernel(%arg0: i32, %arg1: memref<8x128xf32, #tpu.memory_space<vmem>>, %arg2: memref<8x128xf32, #tpu.memory_space<vmem>>, %arg3: memref<8x512xf32, #tpu.memory_space<vmem>>, %arg4: memref<1x1x1xf32, #tpu.memory_space<vmem>>) attributes {dimension_semantics = [#tpu.dimension_semantics<parallel>], iteration_bounds = array<i64: 2>, scalar_prefetch = 0 : i64, scratch_operands = 0 : i64, tpu.core_type = #tpu.core_type<tc>, window_params = [{transform_indices = @transform_0, window_bounds = array<i64: 8, 128>}, {transform_indices = @transform_1, window_bounds = array<i64: 8, 128>}, {transform_indices = @transform_2, window_bounds = array<i64: 8, 512>}, {transform_indices = @transform_3, window_bounds = array<i64: 1, 1, 1>}]} {
    %c0 = arith.constant 0 : index
    %c0_0 = arith.constant 0 : index
    %0 = vector.load %arg1[%c0, %c0_0] : memref<8x128xf32, #tpu.memory_space<vmem>>, vector<8x128xf32>
    %c0_1 = arith.constant 0 : index
    %c0_2 = arith.constant 0 : index
    %1 = vector.load %arg2[%c0_1, %c0_2] : memref<8x128xf32, #tpu.memory_space<vmem>>, vector<8x128xf32>
    %2 = arith.mulf %0, %1 : vector<8x128xf32>
    %cst = arith.constant dense<0.000000e+00> : vector<8xf32>
    %3 = vector.multi_reduction <add>, %2, %cst [1] : vector<8x128xf32> to vector<8xf32>
    %4 = vector.shape_cast %3 : vector<8xf32> to vector<8x1xf32>
    %cst_3 = arith.constant 0.000000e+00 : f32
    %5 = vector.broadcast %cst_3 : f32 to vector<8x1xf32>
    %6 = arith.minimumf %4, %5 : vector<8x1xf32>
    %7 = math.absf %4 : vector<8x1xf32>
    %cst_4 = arith.constant 0.000000e+00 : f32
    %8 = vector.broadcast %cst_4 : f32 to vector<8x1xf32>
    %9 = arith.subf %8, %7 : vector<8x1xf32>
    %10 = math.exp %9 : vector<8x1xf32>
    %11 = math.log1p %10 : vector<8x1xf32>
    %12 = arith.subf %6, %11 : vector<8x1xf32>
    %c0_5 = arith.constant 0 : index
    %c0_6 = arith.constant 0 : index
    %13 = vector.load %arg3[%c0_5, %c0_6] : memref<8x512xf32, #tpu.memory_space<vmem>>, vector<8x128xf32>
    %14 = arith.mulf %13, %0 : vector<8x128xf32>
    %cst_7 = arith.constant dense<0.000000e+00> : vector<8xf32>
    %15 = vector.multi_reduction <add>, %14, %cst_7 [1] : vector<8x128xf32> to vector<8xf32>
    %16 = vector.shape_cast %15 : vector<8xf32> to vector<8x1xf32>
    %cst_8 = arith.constant 0.000000e+00 : f32
    %17 = vector.broadcast %cst_8 : f32 to vector<8x1xf32>
    %18 = arith.subf %17, %16 : vector<8x1xf32>
    %cst_9 = arith.constant 0.000000e+00 : f32
    %19 = vector.broadcast %cst_9 : f32 to vector<8x1xf32>
    %20 = arith.minimumf %18, %19 : vector<8x1xf32>
    %21 = math.absf %18 : vector<8x1xf32>
    %cst_10 = arith.constant 0.000000e+00 : f32
    %22 = vector.broadcast %cst_10 : f32 to vector<8x1xf32>
    %23 = arith.subf %22, %21 : vector<8x1xf32>
    %24 = math.exp %23 : vector<8x1xf32>
    %25 = math.log1p %24 : vector<8x1xf32>
    %26 = arith.subf %20, %25 : vector<8x1xf32>
    %27 = arith.addf %12, %26 : vector<8x1xf32>
    %c0_11 = arith.constant 0 : index
    %c128 = arith.constant 128 : index
    %28 = vector.load %arg3[%c0_11, %c128] : memref<8x512xf32, #tpu.memory_space<vmem>>, vector<8x128xf32>
    %29 = arith.mulf %28, %0 : vector<8x128xf32>
    %cst_12 = arith.constant dense<0.000000e+00> : vector<8xf32>
    %30 = vector.multi_reduction <add>, %29, %cst_12 [1] : vector<8x128xf32> to vector<8xf32>
    %31 = vector.shape_cast %30 : vector<8xf32> to vector<8x1xf32>
    %cst_13 = arith.constant 0.000000e+00 : f32
    %32 = vector.broadcast %cst_13 : f32 to vector<8x1xf32>
    %33 = arith.subf %32, %31 : vector<8x1xf32>
    %cst_14 = arith.constant 0.000000e+00 : f32
    %34 = vector.broadcast %cst_14 : f32 to vector<8x1xf32>
    %35 = arith.minimumf %33, %34 : vector<8x1xf32>
    %36 = math.absf %33 : vector<8x1xf32>
    %cst_15 = arith.constant 0.000000e+00 : f32
    %37 = vector.broadcast %cst_15 : f32 to vector<8x1xf32>
    %38 = arith.subf %37, %36 : vector<8x1xf32>
    %39 = math.exp %38 : vector<8x1xf32>
    %40 = math.log1p %39 : vector<8x1xf32>
    %41 = arith.subf %35, %40 : vector<8x1xf32>
    %42 = arith.addf %27, %41 : vector<8x1xf32>
    %c0_16 = arith.constant 0 : index
    %c256 = arith.constant 256 : index
    %43 = vector.load %arg3[%c0_16, %c256] : memref<8x512xf32, #tpu.memory_space<vmem>>, vector<8x128xf32>
    %44 = arith.mulf %43, %0 : vector<8x128xf32>
    %cst_17 = arith.constant dense<0.000000e+00> : vector<8xf32>
    %45 = vector.multi_reduction <add>, %44, %cst_17 [1] : vector<8x128xf32> to vector<8xf32>
    %46 = vector.shape_cast %45 : vector<8xf32> to vector<8x1xf32>
    %cst_18 = arith.constant 0.000000e+00 : f32
    %47 = vector.broadcast %cst_18 : f32 to vector<8x1xf32>
    %48 = arith.subf %47, %46 : vector<8x1xf32>
    %cst_19 = arith.constant 0.000000e+00 : f32
    %49 = vector.broadcast %cst_19 : f32 to vector<8x1xf32>
    %50 = arith.minimumf %48, %49 : vector<8x1xf32>
    %51 = math.absf %48 : vector<8x1xf32>
    %cst_20 = arith.constant 0.000000e+00 : f32
    %52 = vector.broadcast %cst_20 : f32 to vector<8x1xf32>
    %53 = arith.subf %52, %51 : vector<8x1xf32>
    %54 = math.exp %53 : vector<8x1xf32>
    %55 = math.log1p %54 : vector<8x1xf32>
    %56 = arith.subf %50, %55 : vector<8x1xf32>
    %57 = arith.addf %42, %56 : vector<8x1xf32>
    %c0_21 = arith.constant 0 : index
    %c384 = arith.constant 384 : index
    %58 = vector.load %arg3[%c0_21, %c384] : memref<8x512xf32, #tpu.memory_space<vmem>>, vector<8x128xf32>
    %59 = arith.mulf %58, %0 : vector<8x128xf32>
    %cst_22 = arith.constant dense<0.000000e+00> : vector<8xf32>
    %60 = vector.multi_reduction <add>, %59, %cst_22 [1] : vector<8x128xf32> to vector<8xf32>
    %61 = vector.shape_cast %60 : vector<8xf32> to vector<8x1xf32>
    %cst_23 = arith.constant 0.000000e+00 : f32
    %62 = vector.broadcast %cst_23 : f32 to vector<8x1xf32>
    %63 = arith.subf %62, %61 : vector<8x1xf32>
    %cst_24 = arith.constant 0.000000e+00 : f32
    %64 = vector.broadcast %cst_24 : f32 to vector<8x1xf32>
    %65 = arith.minimumf %63, %64 : vector<8x1xf32>
    %66 = math.absf %63 : vector<8x1xf32>
    %cst_25 = arith.constant 0.000000e+00 : f32
    %67 = vector.broadcast %cst_25 : f32 to vector<8x1xf32>
    %68 = arith.subf %67, %66 : vector<8x1xf32>
    %69 = math.exp %68 : vector<8x1xf32>
    %70 = math.log1p %69 : vector<8x1xf32>
    %71 = arith.subf %65, %70 : vector<8x1xf32>
    %72 = arith.addf %57, %71 : vector<8x1xf32>
    %73 = tpu.iota {dimensions = array<i32: 0>} : vector<8x1xi32>
    %c8_i32 = arith.constant 8 : i32
    %74 = arith.muli %arg0, %c8_i32 : i32
    %75 = vector.broadcast %74 : i32 to vector<8x1xi32>
    %76 = arith.addi %75, %73 : vector<8x1xi32>
    %c16_i32 = arith.constant 16 : i32
    %77 = vector.broadcast %c16_i32 : i32 to vector<8x1xi32>
    %78 = arith.cmpi slt, %76, %77 : vector<8x1xi32>
    %cst_26 = arith.constant 0.000000e+00 : f32
    %79 = vector.broadcast %cst_26 : f32 to vector<8x1xf32>
    %80 = arith.select %78, %72, %79 : vector<8x1xi1>, vector<8x1xf32>
    %81 = vector.shape_cast %80 : vector<8x1xf32> to vector<1x8x1xf32>
    %cst_27 = arith.constant dense<0.000000e+00> : vector<1xf32>
    %82 = vector.multi_reduction <add>, %81, %cst_27 [1, 2] : vector<1x8x1xf32> to vector<1xf32>
    %83 = vector.shape_cast %82 : vector<1xf32> to vector<1x1x1xf32>
    %84 = vector.extract %83[0, 0, 0] : f32 from vector<1x1x1xf32>
    %85 = vector.broadcast %84 : f32 to vector<1x1x1xf32>
    %c0_28 = arith.constant 0 : index
    %c0_29 = arith.constant 0 : index
    %c0_30 = arith.constant 0 : index
    %86 = vector.load %arg4[%c0_28, %c0_29, %c0_30] : memref<1x1x1xf32, #tpu.memory_space<vmem>>, vector<1x1x1xf32>
    tpu.vector_store %arg4[%c0_28, %c0_29, %c0_30], %85 {strides = array<i32>} : memref<1x1x1xf32, #tpu.memory_space<vmem>>, vector<1x1x1xf32>,
    return
  }
  func.func @transform_0(%arg0: i32) -> (i32, i32) {
    %c0_i32 = arith.constant 0 : i32
    %c0_i32_0 = arith.constant 0 : i32
    return %arg0, %c0_i32 : i32, i32
  }
  func.func @transform_1(%arg0: i32) -> (i32, i32) {
    %c0_i32 = arith.constant 0 : i32
    %c0_i32_0 = arith.constant 0 : i32
    return %arg0, %c0_i32 : i32, i32
  }
  func.func @transform_2(%arg0: i32) -> (i32, i32) {
    %c0_i32 = arith.constant 0 : i32
    %c0_i32_0 = arith.constant 0 : i32
    return %arg0, %c0_i32 : i32, i32
  }
  func.func @transform_3(%arg0: i32) -> (i32, i32, i32) {
    %c0_i32 = arith.constant 0 : i32
    %c0_i32_0 = arith.constant 0 : i32
    %c0_i32_1 = arith.constant 0 : i32
    return %arg0, %c0_i32, %c0_i32_0 : i32, i32, i32
  }
}

</mosaic_0001>

<bundles_post_ra>
// kernel: tpu_custom_call.1
= control target key start
LH: loop header
LB: loop body
LE: loop exit
PB: predicated region body
PF: predicated region fallthrough
CT: control target
= control target key end

     0   :  { %8 = vsyncpa [#allocation3], 0  ;;  %s941_s0 = inlined_call_operand.hbm [shape: f32[16,128], index: 0, kind: input, shape index: {}]   ;;  %s942_s1 = inlined_call_operand.hbm [shape: f32[16,128], index: 1, kind: input, shape index: {}]   ;;  %s943_s2 = inlined_call_operand.hbm [shape: f32[16,512], index: 2, kind: input, shape index: {}]   ;;  %s944_s3 = inlined_call_operand.vmem [shape: f32[2,1,1], index: 3, kind: output, shape index: {}]  }
   0x1   :  { %10 = vsyncpa [#allocation3 + $0x1], 0 }
   0x2   :  { %11 = vsyncpa [#allocation5], 0 }
   0x3   :  { %13 = vsyncpa [#allocation5 + $0x1], 0  ;;  %s725_s12 = smov 0   ;;  %s727_s13 = smov 0  }
   0x4   :  { %s729_s14 = smov 0   ;;  %s731_s15 = smov 0  }
   0x5 LB: > { %s744_s16 = sadd.s32 4294967295, %s700_s15   ;;  %s747_s17 = sadd.s32 1, %s700_s15   ;;  %s700_s15 = sphi %s731_s15, %s965_s15   ;;  %s696_s14 = sphi %s729_s14, %s964_s14   ;;  %s692_s13 = sphi %s727_s13, %s963_s13   ;;  %s688_s12 = sphi %s725_s12, %s962_s12  }
   0x6   : > { %s23_s18 = ssub.s32 %s700_s15, %s747_s17  ;;  %s26_s19 = sadd.s32 1, %s696_s14 }
   0x7   : > { %p24_p0 = scmp.eq.s32.totalorder %s23_s18, 0  ;;  %p33_p1 = scmp.ne.s32.totalorder %s696_s14, %s692_s13 }
   0x8   : > { %p34_p2 = scmp.eq.s32.totalorder %s700_s15, 0  ;;  %p39_p3 = scmp.ne.s32.totalorder %s692_s13, %s688_s12 }
   0x9   : > { %s757_s20 = scalar_select %p24_p0, %s696_s14, %s26_s19  }
   0xa   : > { %p35_p4 = por %p34_p2, %p33_p1  ;;  %p40_p5 = scmp.eq.s32.totalorder %s744_s16, 0 }
   0xb   : > { %p519_p6 = scmp.lt.s32.totalorder %s700_s15, 2  ;;  %s766_s22 = sand.u32 1, %s696_s14  }
   0xc   : > { %p761_p7 = por %p40_p5, %p39_p3  ;;  %s486_s23 = sshll.u32 %s766_s22, 3 }
   0xd   : > { %s487_s24 = sshll.u32 %s700_s15, 7  ;;  %p770_p8 = pnand %p519_p6, %p35_p4 }
   0xe   : > { %s948_s21 = scalar_select %p761_p7, 1, 0 }
   0xf   : > { %s949_s25 = scalar_select %p770_p8, 1, 0 }
  0x10   : > { %s159_s26 = sand.u32 1, %s700_s15   ;;  %s780_s29 = scalar_lea.hbm %s942_s1, %s487_s24 }
  0x11   : > { %s163_s30 = scalar_lea.vmem [#allocation4], %s486_s23  ;;  %s788_s5 = scalar_lea.sflag [#allocation5], %s159_s26 }
  0x12   : > { %s170_s4 = sshll.u32 %s163_s30, 4  ;;  %s572_s6 = scalar_lea.hbm %s780_s29, 128  ;;  %s785_s4 = int_to_ptr.vmem [resolvable:$true] %s170_s4 }
  0x13   : > { %p573_p11 = scmp.ne.s32.totalorder %s780_s29, %s572_s6  ;;  %p794_p12 = pneg %p770_p8 }
  0x14   : > { %s577_s10 = scalar_lea.hbm %s942_s1, 256  ;;  %p578_p1 = scmp.lt.u32.totalorder %s780_s29, %s942_s1 }
  0x15   : > { %p575_p13 = pnand %p794_p12, %p573_p11  ;;  %p579_p2 = scmp.lt.u32.totalorder %s577_s10, %s572_s6 }
  0x16   : > { %p581_p4 = scmp.lt.u32.totalorder %s572_s6, %s780_s29 }
  0x17   : > { %p576_p0 = pneg %p575_p13  ;;  %p580_p3 = por %p579_p2, %p578_p1 }
  0x19   : > { %p582_p5 = por %p581_p4, %p580_p3 }
  0x1b   : > { %p583_p6 = pnand %p582_p5, %p576_p0 }
  0x1d   : > { %586 = shalt.err (!%p583_p6)
}
  0x1e   : > { %s587_s18 = scalar_lea.vmem %s785_s4, 128  ;;  %s702_s19 = smov [#allocation4]  }
  0x1f   : > { %p588_p11 = scmp.ne.s32.totalorder %s785_s4, %s587_s18  ;;  %s592_s26 = sshll.u32 %s702_s19, 4  ;;  %s593_s26 = int_to_ptr.vmem [resolvable:$false] %s592_s26 }
  0x20   : > { %s594_s27 = scalar_lea.vmem %s593_s26, 256  ;;  %p595_p10 = scmp.lt.s32.totalorder %s785_s4, %s593_s26 }
  0x21   : > { %p590_p13 = pnand %p588_p11, %p794_p12  ;;  %p596_p7 = scmp.lt.s32.totalorder %s594_s27, %s587_s18 }
  0x23   : > { %p591_p9 = pneg %p590_p13  ;;  %p597_p1 = por %p596_p7, %p595_p10 }
  0x25   : > { %p598_p2 = pnand %p597_p1, %p591_p9 }
  0x27   : > { %601 = shalt.err (!%p598_p2)
}
  0x28   : > { %515 = dma.hbm_to_vmem [thread:$0]  (!%p770_p8), %s780_s29, 128, %s785_s4, %s788_s5  }
  0x29   : > { %p951_p0 = scmp.lt.s32.totalorder %s700_s15, 3  ;;  %p952_p3 = scmp.ge.s32.totalorder %s700_s15, 1 }
  0x2a   : > { %s831_s8 = scalar_lea.hbm %s941_s0, %s487_s24  ;;  %s145_s9 = scalar_lea.vmem [#allocation2], %s486_s23 }
  0x2b   : > { %p822_p4 = pnand %p952_p3, %p951_p0  ;;  %s152_s10 = sshll.u32 %s145_s9, 4  ;;  %s153_s10 = int_to_ptr.vmem [resolvable:$true] %s152_s10 }
  0x2c   : > { %s490_s29 = sshll.u32 %s766_s22, 5  ;;  %s142_s4 = scalar_lea.sflag [#allocation3], %s766_s22 }
  0x2d   : > { %s953_s28 = scalar_select %p822_p4, 1, 0 }
  0x2e   : > { %s602_s11 = scalar_lea.hbm %s831_s8, 128  ;;  %s607_s24 = scalar_lea.hbm %s941_s0, 256 }
  0x2f   : > { %p603_p7 = scmp.ne.s32.totalorder %s831_s8, %s602_s11  ;;  %p608_p5 = scmp.lt.u32.totalorder %s831_s8, %s941_s0 }
  0x30   : > { %p609_p6 = scmp.lt.u32.totalorder %s607_s24, %s602_s11  ;;  %p611_p13 = scmp.lt.u32.totalorder %s602_s11, %s831_s8 }
  0x31   : > { %p605_p9 = pnand %p603_p7, %p794_p12 }
  0x32   : > { %p610_p11 = por %p609_p6, %p608_p5 }
  0x33   : > { %p606_p10 = pneg %p605_p9 }
  0x34   : > { %p612_p1 = por %p611_p13, %p610_p11 }
  0x36   : > { %p613_p2 = pnand %p612_p1, %p606_p10 }
  0x38   : > { %616 = shalt.err (!%p613_p2)
}
  0x39   : > { %s617_s23 = scalar_lea.vmem %s153_s10, 128  ;;  %s703_s27 = smov [#allocation2]  }
  0x3a   : > { %p618_p0 = scmp.ne.s32.totalorder %s153_s10, %s617_s23  ;;  %s622_s30 = sshll.u32 %s703_s27, 4  ;;  %s623_s30 = int_to_ptr.vmem [resolvable:$false] %s622_s30 }
  0x3b   : > { %s624_s6 = scalar_lea.vmem %s623_s30, 256  ;;  %p625_p9 = scmp.lt.s32.totalorder %s153_s10, %s623_s30 }
  0x3c   : > { %p620_p3 = pnand %p618_p0, %p794_p12  ;;  %p626_p4 = scmp.lt.s32.totalorder %s624_s6, %s617_s23 }
  0x3e   : > { %p621_p7 = pneg %p620_p3  ;;  %p627_p8 = por %p626_p4, %p625_p9 }
  0x40   : > { %p628_p5 = pnand %p627_p8, %p621_p7 }
  0x42   : > { %631 = shalt.err (!%p628_p5)
}
  0x43   : > { %p954_p6 = scmp.ne.s32.totalorder %s949_s25, 0  ;;  %s500_s9 = sshll.u32 %s700_s15, 9 }
  0x44   : > { %s181_s11 = scalar_lea.vmem [#allocation6], %s490_s29  ;;  %s187_s19 = scalar_lea.hbm %s943_s2, %s500_s9 }
  0x45   : > { %512 = dma.hbm_to_vmem [thread:$0]  (!%p954_p6), %s831_s8, 128, %s153_s10, %s142_s4  }
  0x46   : > { %s189_s12 = sshll.u32 %s181_s11, 4  ;;  %s632_s26 = scalar_lea.hbm %s187_s19, 512  ;;  %s190_s12 = int_to_ptr.vmem [resolvable:$true] %s189_s12 }
  0x47   : > { %p633_p4 = scmp.ne.s32.totalorder %s187_s19, %s632_s26  ;;  %s637_s30 = scalar_lea.hbm %s943_s2, 1024 }
  0x48   : > { %p638_p11 = scmp.lt.u32.totalorder %s187_s19, %s943_s2  ;;  %p639_p13 = scmp.lt.u32.totalorder %s637_s30, %s632_s26 }
  0x49   : > { %p635_p8 = pnand %p633_p4, %p794_p12  ;;  %p641_p2 = scmp.lt.u32.totalorder %s632_s26, %s187_s19 }
  0x4a   : > { %p640_p1 = por %p639_p13, %p638_p11 }
  0x4b   : > { %p636_p10 = pneg %p635_p8 }
  0x4c   : > { %p642_p0 = por %p641_p2, %p640_p1 }
  0x4e   : > { %p643_p3 = pnand %p642_p0, %p636_p10 }
  0x50   : > { %646 = shalt.err (!%p643_p3)
}
  0x51   : > { %s647_s15 = scalar_lea.vmem %s190_s12, 512  ;;  %s704_s22 = smov [#allocation6]  }
  0x52   : > { %p648_p7 = scmp.ne.s32.totalorder %s190_s12, %s647_s15  ;;  %s652_s10 = sshll.u32 %s704_s22, 4  ;;  %s653_s10 = int_to_ptr.vmem [resolvable:$false] %s652_s10 }
  0x53   : > { %s654_s29 = scalar_lea.vmem %s653_s10, 1024  ;;  %p655_p4 = scmp.lt.s32.totalorder %s190_s12, %s653_s10 }
  0x54   : > { %p650_p9 = pnand %p648_p7, %p794_p12  ;;  %p656_p8 = scmp.lt.s32.totalorder %s654_s29, %s647_s15 }
  0x56   : > { %p651_p5 = pneg %p650_p9  ;;  %p657_p6 = por %p656_p8, %p655_p4 }
  0x58   : > { %p658_p11 = pnand %p657_p6, %p651_p5 }
  0x5a   : > { %661 = shalt.err (!%p658_p11)
}
  0x5b   : > { %p955_p13 = scmp.ne.s32.totalorder %s949_s25, 0  ;;  %p956_p10 = scmp.ne.s32.totalorder %s953_s28, 0 }
  0x5c   : > { %s200_s7 = sand.u32 (!%p956_p10), 1, %s692_s13   ;;  %p957_p12 = scmp.ne.s32.totalorder (!%p956_p10), %s948_s21, 0 }
  0x5d   : > { %518 = dma.hbm_to_vmem [thread:$0]  (!%p955_p13), %s187_s19, 512, %s190_s12, %s788_s5  }
  0x5e   : > { %198 = sbr.rel (%p956_p10) target bundleno = 508 (0x1fc), region = 32  ;;  %s494_s4 = sshll.u32 (!%p956_p10), %s200_s7, 3 }
  0x5f   : > { %s201_s9 = scalar_lea.sflag (!%p956_p10), [#allocation3], %s200_s7  ;;  %s204_s11 = scalar_lea.vmem (!%p956_p10), [#allocation2], %s494_s4 }
  0x65   : > { %679 = dma.done.wait (%p957_p12), %s201_s9, 128  }
  0x66   : > { %681 = vsyncadd (%p957_p12), %s201_s9, 4294967168  ;;  %s209_s18 = sand.u32 1, %s744_s16   ;;  %s213_s24 = scalar_lea.vmem [#allocation4], %s494_s4 }
  0x67   : > { %s210_s25 = scalar_lea.sflag [#allocation5], %s209_s18 }
  0x68   : > { %683 = dma.done.wait (%p957_p12), %s210_s25, 640  }
  0x69   : > { %685 = vsyncadd (%p957_p12), %s210_s25, 4294966656  ;;  %s496_s5 = sshll.u32 %s200_s7, 5  ;;  %v256_v0 = vld [vmem:[%s204_s11] sm:$0xff]  ;;  %v257_v6 = vld [vmem:[%s213_s24] sm:$0xff]  ;;  %v360_v48 = vlaneseq  ;;  %s497_s21 = sshll.u32 %s744_s16, 3  ;;  %vm367_vm6 = vcmask 7168  }
  0x6a   : > { %s222_s28 = scalar_lea.vmem [#allocation6], %s496_s5  ;;  %v258_v8 = vmul.f32 %v257_v6, %v256_v0  ;;  %p253_p6 = scmp.lt.s32.totalorder %s744_s16, 1  ;;  %vm379_vm7 = vcmask 0  }
  0x6b   : > { %v297_v1 = vld [vmem:[%s222_s28 + $0x8] sm:$0xff]  ;;  %v276_v2 = vld [vmem:[%s222_s28] sm:$0xff]  ;;  %v318_v5 = vld [vmem:[%s222_s28 + $0x10] sm:$0xff]  ;;  %v361_v61 = vshrl.u32 %v360_v48, 7 }
  0x6c   : > { %v298_v3 = vmul.f32 %v297_v1, %v256_v0  ;;  %v277_v4 = vmul.f32 %v276_v2, %v256_v0  ;;  %v319_v7 = vmul.f32 %v318_v5, %v256_v0  ;;  %v339_v9 = vld [vmem:[%s222_s28 + $0x18] sm:$0xff]  ;;  %s967_s16 = smov (!%p253_p6, %s744_s16), 1 }
  0x6d   : > { %v340_v10 = vmul.f32 %v339_v9, %v256_v0  ;;  %s255_s26 = scalar_lea.vmem %s944_s3, %s967_s16 }
  0x6e   : > { %299 = vadd.xlane.f32.xlu1 %v298_v3  ;;  %278 = vadd.xlane.f32.xlu0 %v277_v4 }
  0x72   : > { %320 = vadd.xlane.f32.xlu1 %v319_v7  ;;  %259 = vadd.xlane.f32.xlu0 %v258_v8 }
  0x76   : > { %341 = vadd.xlane.f32.xlu0 %v340_v10 }
  0xfb   : > { %v885_v11 = vpop.xlane.xlu1 %299  ;;  %v279_v12 = vpop.xlane.xlu0 %278 }
  0xfc   : > { %v301_v13 = vsub.f32 0.0, %v885_v11  ;;  %v280_v14 = vsub.f32 0.0, %v279_v12 }
  0xfe   : > { %v303_v15 = vand.u32 2147483647, %v301_v13  ;;  %v282_v16 = vand.u32 2147483647, %v280_v14  ;;  %v281_v58 = vmin.f32 %v280_v14, 0.0 }
  0xff   : > { %v890_v17 = vpop.xlane.xlu1 %320  ;;  %v892_v18 = vpop.xlane.xlu0 %259 }
 0x100   : > { %v304_v19 = vsub.f32 0.0, %v303_v15  ;;  %v283_v20 = vsub.f32 0.0, %v282_v16  ;;  %v322_v21 = vsub.f32 0.0, %v890_v17  ;;  %v262_v22 = vand.u32 2147483647, %v892_v18 }
 0x101   : > { %v261_v1 = vmin.f32 %v892_v18, 0.0 }
 0x102   : > { %v305_v23 = vmul.f32 1.442695, %v304_v19  ;;  %v284_v24 = vmul.f32 1.442695, %v283_v20  ;;  %v324_v25 = vand.u32 2147483647, %v322_v21  ;;  %v363_v20 = vstv %s497_s21 }
 0x103   : > { %v263_v26 = vsub.f32 0.0, %v262_v22  ;;  %v898_v27 = vpop.xlane.xlu0 %341 }
 0x104   : > { %552 = vpow2.f32 %v305_v23  ;;  %v343_v28 = vsub.f32 0.0, %v898_v27  ;;  %v325_v29 = vsub.f32 0.0, %v324_v25  ;;  %v302_v23 = vmin.f32 %v301_v13, 0.0 }
 0x105   : > { %554 = vpow2.f32 %v284_v24  ;;  %v264_v30 = vmul.f32 1.442695, %v263_v26  ;;  %v323_v26 = vmin.f32 %v322_v21, 0.0 }
 0x106   : > { %v345_v31 = vand.u32 2147483647, %v343_v28  ;;  %v326_v32 = vmul.f32 1.442695, %v325_v29 }
 0x107   : > { %556 = vpow2.f32 %v264_v30 }
 0x108   : > { %v346_v33 = vsub.f32 0.0, %v345_v31  ;;  %558 = vpow2.f32 %v326_v32 }
 0x10a   : > { %v347_v34 = vmul.f32 1.442695, %v346_v33 }
 0x10c   : > { %560 = vpow2.f32 %v347_v34  ;;  %v344_v34 = vmin.f32 %v343_v28, 0.0 }
 0x10e   : > { %v553_v35 = vpop.eup %552 }
 0x10f   : > { %v555_v36 = vpop.eup %554  ;;  %v307_v37 = vadd.f32 1.0, %v553_v35  ;;  %v310_v45 = vmul.f32 -0.5, %v553_v35  ;;  %v313_v53 = vand.u32 2147483647, %v553_v35 }
 0x110   : > { %v286_v38 = vadd.f32 1.0, %v555_v36  ;;  %v289_v44 = vmul.f32 -0.5, %v555_v36  ;;  %v292_v54 = vand.u32 2147483647, %v555_v36 }
 0x111   : > { %v557_v39 = vpop.eup %556  ;;  %562 = vlog2.f32 %v307_v37  ;;  %v311_v52 = vadd.f32 1.0, %v310_v45  ;;  %vm905_vm0 = vcmp.lt.f32.partialorder %v313_v53, 0.0004427343 }
 0x112   : > { %564 = vlog2.f32 %v286_v38  ;;  %v266_v40 = vadd.f32 1.0, %v557_v39  ;;  %v559_v41 = vpop.eup %558  ;;  %v269_v47 = vmul.f32 -0.5, %v557_v39  ;;  %v290_v49 = vadd.f32 1.0, %v289_v44 }
 0x113   : > { %v328_v42 = vadd.f32 1.0, %v559_v41  ;;  %v331_v50 = vmul.f32 -0.5, %v559_v41  ;;  %v272_v60 = vand.u32 2147483647, %v557_v39  ;;  %v312_v3 = vmul.f32 %v553_v35, %v311_v52 }
 0x114   : > { %566 = vlog2.f32 %v266_v40  ;;  %v270_v56 = vadd.f32 1.0, %v269_v47  ;;  %v291_v63 = vmul.f32 %v555_v36, %v290_v49  ;;  %vm909_vm1 = vcmp.lt.f32.partialorder %v292_v54, 0.0004427343 }
 0x115   : > { %568 = vlog2.f32 %v328_v42  ;;  %v332_v0 = vadd.f32 1.0, %v331_v50  ;;  %v334_v6 = vand.u32 2147483647, %v559_v41  ;;  %vm273_vm2 = vcmp.lt.f32.partialorder %v272_v60, 0.0004427343 }
 0x116   : > { %v561_v43 = vpop.eup %560  ;;  %v271_v10 = vmul.f32 %v557_v39, %v270_v56  ;;  %v364_v36 = vadd.s32 %v363_v20, %v361_v61 }
 0x117   : > { %v349_v46 = vadd.f32 1.0, %v561_v43  ;;  %v352_v57 = vmul.f32 -0.5, %v561_v43  ;;  %v355_v15 = vand.u32 2147483647, %v561_v43  ;;  %v333_v18 = vmul.f32 %v559_v41, %v332_v0 }
 0x118   : > { %vm335_vm3 = vcmp.lt.f32.partialorder %v334_v6, 0.0004427343  ;;  %vm365_vm5 = vcmp.lt.s32.totalorder %v364_v36, 16 }
 0x119   : > { %570 = vlog2.f32 %v349_v46  ;;  %v353_v12 = vadd.f32 1.0, %v352_v57  ;;  %vm356_vm4 = vcmp.lt.f32.partialorder %v355_v15, 0.0004427343 }
 0x11b   : > { %v563_v51 = vpop.eup %562  ;;  %v354_v31 = vmul.f32 %v561_v43, %v353_v12 }
 0x11c   : > { %v565_v55 = vpop.eup %564  ;;  %v309_v62 = vmul.f32 0.6931472, %v563_v51 }
 0x11d   : > { %v288_v59 = vmul.f32 0.6931472, %v565_v55 }
 0x11e   : > { %v567_v2 = vpop.eup %566  ;;  %v315_v16 = vsel %vm905_vm0, %v312_v3, %v309_v62 }
 0x11f   : > { %v569_v7 = vpop.eup %568  ;;  %v294_v8 = vsel %vm909_vm1, %v291_v63, %v288_v59  ;;  %v268_v9 = vmul.f32 0.6931472, %v567_v2  ;;  %v316_v32 = vsub.f32 %v302_v23, %v315_v16 }
 0x120   : > { %v330_v14 = vmul.f32 0.6931472, %v569_v7  ;;  %v295_v24 = vsub.f32 %v281_v58, %v294_v8 }
 0x121   : > { %v274_v19 = vsel %vm273_vm2, %v271_v10, %v268_v9 }
 0x122   : > { %v275_v25 = vsub.f32 %v261_v1, %v274_v19  ;;  %v336_v29 = vsel %vm335_vm3, %v333_v18, %v330_v14 }
 0x123   : > { %v571_v22 = vpop.eup %570  ;;  %v337_v37 = vsub.f32 %v323_v26, %v336_v29 }
 0x124   : > { %v351_v30 = vmul.f32 0.6931472, %v571_v22  ;;  %v296_v33 = vadd.f32 %v295_v24, %v275_v25 }
 0x126   : > { %v357_v35 = vsel %vm356_vm4, %v354_v31, %v351_v30  ;;  %v317_v13 = vadd.f32 %v316_v32, %v296_v33 }
 0x127   : > { %v358_v11 = vsub.f32 %v344_v34, %v357_v35 }
 0x128   : > { %v338_v38 = vadd.f32 %v337_v37, %v317_v13 }
 0x12a   : > { %v359_v17 = vadd.f32 %v358_v11, %v338_v38 }
 0x12c   : > { %v366_v21 = vsel %vm365_vm5, %v359_v17, 0.0 }
 0x12d   : > { %v368_v39 = vsel %vm367_vm6, %v366_v21, 0.0 }
 0x12e   : > { %369 = vadd.xlane.f32.xlu1 %v368_v39 }
 0x1bb   : > { %v370_v40 = vpop.xlane.xlu1 %369 }
 0x1bc   : > { %v371_v41 = vrot.slane %v370_v40, 4 }
 0x1be   : > { %v372_v42 = vadd.f32 %v371_v41, %v370_v40 }
 0x1c0   : > { %v373_v27 = vrot.slane %v372_v42, 2 }
 0x1c2   : > { %v374_v28 = vadd.f32 %v373_v27, %v372_v42 }
 0x1c4   : > { %v375_v43 = vrot.slane %v374_v28, 1 }
 0x1c6   : > { %v376_v44 = vadd.f32 %v375_v43, %v374_v28 }
 0x1c8   : > { %501 = vpush %v376_v44 }
 0x1f9   : > { %s502_s23 = spop %501 }
 0x1fa   : > { %v378_v45 = vstv %s502_s23 }
 0x1fb   : > { %380 = vst.msk [vmem:[%s255_s26] sm:$0x1] %vm379_vm7, %v378_v45 }
 0x1fc PF: > { %p16_p1 = scmp.ge.s32.totalorder %s747_s17, 4   ;;  %s962_s12 = smov %s692_s13 }
 0x1fd   : > { %s963_s13 = smov %s696_s14  ;;  %s964_s14 = smov %s757_s20 }
 0x1fe   : > { %s965_s15 = smov %s747_s17  ;;  %18 = sbr.rel (!%p16_p1) target bundleno = 5 (0x5), region = 96 }
 0x205   :  { %398 = vsyncpa [#allocation3], 1 }
 0x206   :  { %400 = vsyncpa [#allocation3 + $0x1], 1 }
 0x207   :  { %401 = vsyncpa [#allocation5], 1 }
 0x208   :  { %403 = vsyncpa [#allocation5 + $0x1], 1 }

</bundles_post_ra>
